<compile_context>
chip_gen: v6e
topology: v6e:2x2x1
jax: 0.10.0
libtpu: 0.0.40
codegen_flags: <defaults>
</compile_context>

<pallas_src>
import functools

import jax
import jax.numpy as jnp
from jax.experimental import pallas as pl
from jax.experimental.pallas import tpu as pltpu

HIDDEN = 128
LANE = 128


def _round_up(n, m):
    return ((n + m - 1) // m) * m


def dqn_kernel(x_ref, w1_ref, b1_ref, w2_ref, b2_ref, w3_ref, b3_ref, out_ref):
    # bf16 operands on the MXU, f32 accumulate; bias + ReLU on the VPU in f32;
    # intermediate activations downcast to bf16 before the next MXU pass.
    h1 = jnp.dot(x_ref[...], w1_ref[...], preferred_element_type=jnp.float32) + b1_ref[...]
    h1 = jnp.maximum(h1, 0.0).astype(jnp.bfloat16)

    h2 = jnp.dot(h1, w2_ref[...], preferred_element_type=jnp.float32) + b2_ref[...]
    h2 = jnp.maximum(h2, 0.0).astype(jnp.bfloat16)

    y = jnp.dot(h2, w3_ref[...], preferred_element_type=jnp.float32) + b3_ref[...]
    out_ref[...] = y.astype(out_ref.dtype)


@functools.partial(jax.jit, static_argnames=("block_batch",))
def dq_network_forward(x, params, *, block_batch=256):
    """Fused DQNetwork forward.

    x: [batch, inp_size] float32
    params: w1 [inp,128], b1 [1,128], w2 [128,128], b2 [1,128], w3 [128,op], b3 [1,op]
    Returns [batch, op_size] float32.
    """
    w1, b1, w2, b2, w3, b3 = (
        params["w1"], params["b1"], params["w2"],
        params["b2"], params["w3"], params["b3"],
    )
    batch, inp_size = x.shape
    op_size = w3.shape[1]

    # --- lane/K padding (zero-filled in the wrapper, numerics unchanged) ---
    k_pad = _round_up(max(inp_size, LANE), LANE)     # contraction dim of layer 1
    op_pad = _round_up(max(op_size, LANE), LANE)     # lane-dense output stores

    # --- batch tiling: 256-row tiles fill the v6e/v7x MXU M axis; tiny batches -> 1 block ---
    tb = block_batch if batch >= block_batch else _round_up(batch, 8)
    b_pad = _round_up(batch, tb)

    # Pad + cast operands (x/weights -> bf16 for the MXU; biases stay f32 for the VPU adds).
    x_p = jnp.pad(x, ((0, b_pad - batch), (0, k_pad - inp_size))).astype(jnp.bfloat16)
    w1_p = jnp.pad(w1, ((0, k_pad - inp_size), (0, 0))).astype(jnp.bfloat16)
    w2_p = w2.astype(jnp.bfloat16)
    w3_p = jnp.pad(w3, ((0, 0), (0, op_pad - op_size))).astype(jnp.bfloat16)
    b1_p = b1.astype(jnp.float32)
    b2_p = b2.astype(jnp.float32)
    b3_p = jnp.pad(b3, ((0, 0), (0, op_pad - op_size))).astype(jnp.float32)

    grid = (b_pad // tb,)

    # x / out tiles move with the grid; weights & biases are VMEM-resident (constant index_map).
    x_spec = pl.BlockSpec((tb, k_pad), lambda i: (i, 0))
    w1_spec = pl.BlockSpec((k_pad, HIDDEN), lambda i: (0, 0))
    b1_spec = pl.BlockSpec((1, HIDDEN), lambda i: (0, 0))
    w2_spec = pl.BlockSpec((HIDDEN, HIDDEN), lambda i: (0, 0))
    b2_spec = pl.BlockSpec((1, HIDDEN), lambda i: (0, 0))
    w3_spec = pl.BlockSpec((HIDDEN, op_pad), lambda i: (0, 0))
    b3_spec = pl.BlockSpec((1, op_pad), lambda i: (0, 0))
    out_spec = pl.BlockSpec((tb, op_pad), lambda i: (i, 0))

    # VMEM budget: double-buffered x/out tiles + (conservatively double-buffered) weights.
    tile_bytes = 2 * (tb * k_pad * 2) + 2 * (tb * op_pad * 4)
    weight_bytes = 2 * ((k_pad * HIDDEN + HIDDEN * HIDDEN + HIDDEN * op_pad) * 2
                        + (2 * HIDDEN + op_pad) * 4)
    vmem_bytes = min(max(tile_bytes + weight_bytes + (1 << 20), 16 * 1024 * 1024),
                     64 * 1024 * 1024)

    flops = 2 * b_pad * (k_pad * HIDDEN + HIDDEN * HIDDEN + HIDDEN * op_pad)
    bytes_accessed = (b_pad * k_pad * 2 + b_pad * op_pad * 4
                      + (k_pad * HIDDEN + HIDDEN * HIDDEN + HIDDEN * op_pad) * 2
                      + (2 * HIDDEN + op_pad) * 4)

    out_padded = pl.pallas_call(
        dqn_kernel,
        out_shape=jax.ShapeDtypeStruct((b_pad, op_pad), jnp.float32),
        grid=grid,
        in_specs=[x_spec, w1_spec, b1_spec, w2_spec, b2_spec, w3_spec, b3_spec],
        out_specs=out_spec,
        compiler_params=pltpu.CompilerParams(
            dimension_semantics=("parallel",),
            vmem_limit_bytes=vmem_bytes,
        ),
        cost_estimate=pl.CostEstimate(
            flops=flops, transcendentals=0, bytes_accessed=bytes_accessed),
    )(x_p, w1_p, b1_p, w2_p, b2_p, w3_p, b3_p)

    return out_padded[:batch, :op_size]


def xavier_normal(key, fan_in, fan_out):
    # Matches torch.nn.init.xavier_normal_: std = sqrt(2 / (fan_in + fan_out)).
    std = jnp.sqrt(2.0 / (fan_in + fan_out))
    return jax.random.normal(key, (fan_in, fan_out), dtype=jnp.float32) * std


def init_params(key, inp_size, op_size):
    k1, k2, k3 = jax.random.split(key, 3)
    return {
        "w1": xavier_normal(k1, inp_size, HIDDEN),
        "b1": jnp.zeros((1, HIDDEN), jnp.float32),
        "w2": xavier_normal(k2, HIDDEN, HIDDEN),
        "b2": jnp.zeros((1, HIDDEN), jnp.float32),
        "w3": xavier_normal(k3, HIDDEN, op_size),
        "b3": jnp.zeros((1, op_size), jnp.float32),
    }


def reference_forward(x, p):
    # Mirrors the kernel's mixed precision: bf16 matmul operands, f32 accumulate,
    # f32 bias + ReLU, bf16 between layers.
    f32 = jnp.float32
    xb = x.astype(jnp.bfloat16).astype(f32)
    w1 = p["w1"].astype(jnp.bfloat16).astype(f32)
    w2 = p["w2"].astype(jnp.bfloat16).astype(f32)
    w3 = p["w3"].astype(jnp.bfloat16).astype(f32)
    h1 = jnp.maximum(xb @ w1 + p["b1"], 0.0).astype(jnp.bfloat16).astype(f32)
    h2 = jnp.maximum(h1 @ w2 + p["b2"], 0.0).astype(jnp.bfloat16).astype(f32)
    return h2 @ w3 + p["b3"]


if __name__ == "__main__":
    inp_size = 16   # state vector size for the single-intersection DQN
    op_size = 4     # number of actions
    batch = 2

    key = jax.random.PRNGKey(0)
    k_params, k_x, k_x2 = jax.random.split(key, 3)
    params = init_params(k_params, inp_size, op_size)

    # Small online-RL batch (single grid step).
    x = jax.random.normal(k_x, (batch, inp_size), dtype=jnp.float32)
    out = jax.block_until_ready(dq_network_forward(x, params))
    ref = reference_forward(x, params)
    assert out.shape == (batch, op_size)
    assert jnp.allclose(out, ref, atol=1e-3, rtol=1e-3), float(jnp.max(jnp.abs(out - ref)))

    # Replay-buffer-sized batch (exercises the multi-block batch grid).
    x2 = jax.random.normal(k_x2, (512, inp_size), dtype=jnp.float32)
    out2 = jax.block_until_ready(dq_network_forward(x2, params))
    ref2 = reference_forward(x2, params)
    assert out2.shape == (512, op_size)
    assert jnp.allclose(out2, ref2, atol=1e-3, rtol=1e-3), float(jnp.max(jnp.abs(out2 - ref2)))

    print("KERNEL_OK")
</pallas_src>

<mosaic_0001>
module attributes {stable_mosaic.version = 11 : i64} {
  func.func @dqn_kernel(%arg0: i32, %arg1: memref<8x128xbf16, #tpu.memory_space<vmem>>, %arg2: memref<128x128xbf16, #tpu.memory_space<vmem>>, %arg3: memref<1x128xf32, #tpu.memory_space<vmem>>, %arg4: memref<128x128xbf16, #tpu.memory_space<vmem>>, %arg5: memref<1x128xf32, #tpu.memory_space<vmem>>, %arg6: memref<128x128xbf16, #tpu.memory_space<vmem>>, %arg7: memref<1x128xf32, #tpu.memory_space<vmem>>, %arg8: memref<8x128xf32, #tpu.memory_space<vmem>>) attributes {dimension_semantics = [#tpu.dimension_semantics<parallel>], iteration_bounds = array<i64: 1>, scalar_prefetch = 0 : i64, scratch_operands = 0 : i64, tpu.core_type = #tpu.core_type<tc>, window_params = [{transform_indices = @transform_0, window_bounds = array<i64: 8, 128>}, {pipeline_mode = #tpu.pipeline_mode<synchronous>, transform_indices = @transform_1, window_bounds = array<i64: 128, 128>}, {pipeline_mode = #tpu.pipeline_mode<synchronous>, transform_indices = @transform_2, window_bounds = array<i64: 1, 128>}, {pipeline_mode = #tpu.pipeline_mode<synchronous>, transform_indices = @transform_3, window_bounds = array<i64: 128, 128>}, {pipeline_mode = #tpu.pipeline_mode<synchronous>, transform_indices = @transform_4, window_bounds = array<i64: 1, 128>}, {pipeline_mode = #tpu.pipeline_mode<synchronous>, transform_indices = @transform_5, window_bounds = array<i64: 128, 128>}, {pipeline_mode = #tpu.pipeline_mode<synchronous>, transform_indices = @transform_6, window_bounds = array<i64: 1, 128>}, {transform_indices = @transform_7, window_bounds = array<i64: 8, 128>}]} {
    %c0 = arith.constant 0 : index
    %c0_0 = arith.constant 0 : index
    %0 = vector.load %arg1[%c0, %c0_0] : memref<8x128xbf16, #tpu.memory_space<vmem>>, vector<8x128xbf16>
    %c0_1 = arith.constant 0 : index
    %c0_2 = arith.constant 0 : index
    %1 = vector.load %arg2[%c0_1, %c0_2] : memref<128x128xbf16, #tpu.memory_space<vmem>>, vector<128x128xbf16>
    %cst = arith.constant dense<0.000000e+00> : vector<8x128xf32>
    %2 = tpu.matmul %0, %1, %cst {dimension_numbers = #tpu.dot_dimension_numbers<[1], [0], [0], [1], [0, 0, 1, 1], [], []>} : vector<8x128xbf16>, vector<128x128xbf16>, vector<8x128xf32> -> vector<8x128xf32>
    %c0_3 = arith.constant 0 : index
    %c0_4 = arith.constant 0 : index
    %3 = vector.load %arg3[%c0_3, %c0_4] : memref<1x128xf32, #tpu.memory_space<vmem>>, vector<1x128xf32>
    %4 = vector.broadcast %3 : vector<1x128xf32> to vector<8x128xf32>
    %5 = arith.addf %2, %4 : vector<8x128xf32>
    %cst_5 = arith.constant 0.000000e+00 : f32
    %6 = vector.broadcast %cst_5 : f32 to vector<8x128xf32>
    %7 = arith.maximumf %5, %6 : vector<8x128xf32>
    %8 = arith.truncf %7 : vector<8x128xf32> to vector<8x128xbf16>
    %c0_6 = arith.constant 0 : index
    %c0_7 = arith.constant 0 : index
    %9 = vector.load %arg4[%c0_6, %c0_7] : memref<128x128xbf16, #tpu.memory_space<vmem>>, vector<128x128xbf16>
    %cst_8 = arith.constant dense<0.000000e+00> : vector<8x128xf32>
    %10 = tpu.matmul %8, %9, %cst_8 {dimension_numbers = #tpu.dot_dimension_numbers<[1], [0], [0], [1], [0, 0, 1, 1], [], []>} : vector<8x128xbf16>, vector<128x128xbf16>, vector<8x128xf32> -> vector<8x128xf32>
    %c0_9 = arith.constant 0 : index
    %c0_10 = arith.constant 0 : index
    %11 = vector.load %arg5[%c0_9, %c0_10] : memref<1x128xf32, #tpu.memory_space<vmem>>, vector<1x128xf32>
    %12 = vector.broadcast %11 : vector<1x128xf32> to vector<8x128xf32>
    %13 = arith.addf %10, %12 : vector<8x128xf32>
    %cst_11 = arith.constant 0.000000e+00 : f32
    %14 = vector.broadcast %cst_11 : f32 to vector<8x128xf32>
    %15 = arith.maximumf %13, %14 : vector<8x128xf32>
    %16 = arith.truncf %15 : vector<8x128xf32> to vector<8x128xbf16>
    %c0_12 = arith.constant 0 : index
    %c0_13 = arith.constant 0 : index
    %17 = vector.load %arg6[%c0_12, %c0_13] : memref<128x128xbf16, #tpu.memory_space<vmem>>, vector<128x128xbf16>
    %cst_14 = arith.constant dense<0.000000e+00> : vector<8x128xf32>
    %18 = tpu.matmul %16, %17, %cst_14 {dimension_numbers = #tpu.dot_dimension_numbers<[1], [0], [0], [1], [0, 0, 1, 1], [], []>} : vector<8x128xbf16>, vector<128x128xbf16>, vector<8x128xf32> -> vector<8x128xf32>
    %c0_15 = arith.constant 0 : index
    %c0_16 = arith.constant 0 : index
    %19 = vector.load %arg7[%c0_15, %c0_16] : memref<1x128xf32, #tpu.memory_space<vmem>>, vector<1x128xf32>
    %20 = vector.broadcast %19 : vector<1x128xf32> to vector<8x128xf32>
    %21 = arith.addf %18, %20 : vector<8x128xf32>
    %c0_17 = arith.constant 0 : index
    %c0_18 = arith.constant 0 : index
    %22 = vector.load %arg8[%c0_17, %c0_18] : memref<8x128xf32, #tpu.memory_space<vmem>>, vector<8x128xf32>
    tpu.vector_store %arg8[%c0_17, %c0_18], %21 {strides = array<i32>} : memref<8x128xf32, #tpu.memory_space<vmem>>, vector<8x128xf32>,
    return
  }
  func.func @transform_0(%arg0: i32) -> (i32, i32) {
    %c0_i32 = arith.constant 0 : i32
    %c0_i32_0 = arith.constant 0 : i32
    return %arg0, %c0_i32 : i32, i32
  }
  func.func @transform_1(%arg0: i32) -> (i32, i32) {
    %c0_i32 = arith.constant 0 : i32
    %c0_i32_0 = arith.constant 0 : i32
    %c0_i32_1 = arith.constant 0 : i32
    return %c0_i32, %c0_i32_0 : i32, i32
  }
  func.func @transform_2(%arg0: i32) -> (i32, i32) {
    %c0_i32 = arith.constant 0 : i32
    %c0_i32_0 = arith.constant 0 : i32
    %c0_i32_1 = arith.constant 0 : i32
    return %c0_i32, %c0_i32_0 : i32, i32
  }
  func.func @transform_3(%arg0: i32) -> (i32, i32) {
    %c0_i32 = arith.constant 0 : i32
    %c0_i32_0 = arith.constant 0 : i32
    %c0_i32_1 = arith.constant 0 : i32
    return %c0_i32, %c0_i32_0 : i32, i32
  }
  func.func @transform_4(%arg0: i32) -> (i32, i32) {
    %c0_i32 = arith.constant 0 : i32
    %c0_i32_0 = arith.constant 0 : i32
    %c0_i32_1 = arith.constant 0 : i32
    return %c0_i32, %c0_i32_0 : i32, i32
  }
  func.func @transform_5(%arg0: i32) -> (i32, i32) {
    %c0_i32 = arith.constant 0 : i32
    %c0_i32_0 = arith.constant 0 : i32
    %c0_i32_1 = arith.constant 0 : i32
    return %c0_i32, %c0_i32_0 : i32, i32
  }
  func.func @transform_6(%arg0: i32) -> (i32, i32) {
    %c0_i32 = arith.constant 0 : i32
    %c0_i32_0 = arith.constant 0 : i32
    %c0_i32_1 = arith.constant 0 : i32
    return %c0_i32, %c0_i32_0 : i32, i32
  }
  func.func @transform_7(%arg0: i32) -> (i32, i32) {
    %c0_i32 = arith.constant 0 : i32
    %c0_i32_0 = arith.constant 0 : i32
    return %arg0, %c0_i32 : i32, i32
  }
}

</mosaic_0001>

<bundles_post_ra>
// kernel: dq_network_forward.1
= control target key start
LH: loop header
LB: loop body
LE: loop exit
PB: predicated region body
PF: predicated region fallthrough
CT: control target
= control target key end

     0   :  { %v510_v0 = vmov 0.0   ;;  %vm511_vm0 = vmmov 0   ;;  %s669_s1 = inlined_call_operand.vmem [shape: bf16[128,128], index: 1, kind: input, shape index: {}]   ;;  %s670_s3 = inlined_call_operand.vmem [shape: bf16[128,128], index: 3, kind: input, shape index: {}]   ;;  %s671_s0 = inlined_call_operand.vmem [shape: bf16[8,128], index: 0, kind: input, shape index: {}]   ;;  %s672_s5 = inlined_call_operand.vmem [shape: bf16[128,128], index: 5, kind: input, shape index: {}]   ;;  %s673_s2 = inlined_call_operand.vmem [shape: f32[1,128], index: 2, kind: input, shape index: {}]   ;;  %s674_s4 = inlined_call_operand.vmem [shape: f32[1,128], index: 4, kind: input, shape index: {}]   ;;  %s675_s6 = inlined_call_operand.vmem [shape: f32[1,128], index: 6, kind: input, shape index: {}]   ;;  %s676_s7 = inlined_call_operand.vmem [shape: f32[8,128], index: 7, kind: output, shape index: {}]  }
   0x1   :  { %424 = vmatprep.subr.bf16.mxu0 %v510_v0  ;;  %v486_v1 = vld [vmem:[%s669_s1 + $0x38] sm:$0xff]   ;;  %440 = vmatprep.mubr.msk.bf16.mxu0 %vm511_vm0, %v510_v0  ;;  %v487_v2 = vld [vmem:[%s669_s1 + $0x30] sm:$0xff]   ;;  %v488_v3 = vld [vmem:[%s669_s1 + $0x28] sm:$0xff]  }
   0x2   :  { %444 = vmatprep.subr.bf16.mxu1 %v510_v0  ;;  %460 = vmatprep.mubr.msk.bf16.mxu1 %vm511_vm0, %v510_v0  ;;  %v494_v4 = vld [vmem:[%s670_s3 + $0x38] sm:$0xff]   ;;  %v489_v5 = vld [vmem:[%s669_s1 + $0x20] sm:$0xff]   ;;  %v495_v6 = vld [vmem:[%s670_s3 + $0x30] sm:$0xff]  }
   0x3   :  { %425 = vmatpush3.bf16.msra.mxu0 %v486_v1  ;;  %445 = vmatpush3.bf16.msra.mxu1 %v494_v4  ;;  %v490_v7 = vld [vmem:[%s669_s1 + $0x18] sm:$0xff]   ;;  %v496_v8 = vld [vmem:[%s670_s3 + $0x28] sm:$0xff]   ;;  %v491_v9 = vld [vmem:[%s669_s1 + $0x10] sm:$0xff]  }
   0x4   :  { %426 = vmatprep.subr.bf16.mxu0 %v510_v0  ;;  %446 = vmatprep.subr.bf16.mxu1 %v510_v0  ;;  %v497_v10 = vld [vmem:[%s670_s3 + $0x20] sm:$0xff]   ;;  %v492_v11 = vld [vmem:[%s669_s1 + $0x8] sm:$0xff]   ;;  %v498_v12 = vld [vmem:[%s670_s3 + $0x18] sm:$0xff]  }
   0x5   :  { %v493_v13 = vld [vmem:[%s669_s1] sm:$0xff]   ;;  %v499_v14 = vld [vmem:[%s670_s3 + $0x10] sm:$0xff]   ;;  %v500_v16 = vld [vmem:[%s670_s3 + $0x8] sm:$0xff]  }
   0x6   :  { %v27_v15 = vld [vmem:[%s671_s0] sm:$0xf]  ;;  %v502_v18 = vld [vmem:[%s672_s5 + $0x38] sm:$0xff]   ;;  %v503_v19 = vld [vmem:[%s672_s5 + $0x30] sm:$0xff]  }
   0x7   :  { %427 = vmatpush3.bf16.msra.mxu0 %v487_v2  ;;  %447 = vmatpush3.bf16.msra.mxu1 %v495_v6  ;;  %v501_v17 = vld [vmem:[%s670_s3] sm:$0xff]   ;;  %v504_v20 = vld [vmem:[%s672_s5 + $0x28] sm:$0xff]   ;;  %v506_v22 = vld [vmem:[%s672_s5 + $0x18] sm:$0xff]  }
   0x8   :  { %428 = vmatprep.subr.bf16.mxu0 %v510_v0  ;;  %448 = vmatprep.subr.bf16.mxu1 %v510_v0  ;;  %v505_v21 = vld [vmem:[%s672_s5 + $0x20] sm:$0xff]   ;;  %v507_v23 = vld [vmem:[%s672_s5 + $0x10] sm:$0xff]   ;;  %v508_v32 = vld [vmem:[%s672_s5 + $0x8] sm:$0xff]  }
   0x9   :  { %v370_v24 = vld [vmem:[%s673_s2] ss:$0 sm:$0xff] }
   0xa   :  { %v509_v33 = vld [vmem:[%s672_s5] sm:$0xff]  }
   0xb   :  { %429 = vmatpush3.bf16.msra.mxu0 %v488_v3  ;;  %449 = vmatpush3.bf16.msra.mxu1 %v496_v8  ;;  %v379_v34 = vld [vmem:[%s674_s4] ss:$0 sm:$0xff] }
   0xc   :  { %430 = vmatprep.subr.bf16.mxu0 %v510_v0  ;;  %450 = vmatprep.subr.bf16.mxu1 %v510_v0  ;;  %v388_v42 = vld [vmem:[%s675_s6] ss:$0 sm:$0xff] }
   0xf   :  { %431 = vmatpush3.bf16.msra.mxu0 %v489_v5  ;;  %451 = vmatpush3.bf16.msra.mxu1 %v497_v10 }
  0x10   :  { %432 = vmatprep.subr.bf16.mxu0 %v510_v0  ;;  %452 = vmatprep.subr.bf16.mxu1 %v510_v0 }
  0x13   :  { %433 = vmatpush3.bf16.msra.mxu0 %v490_v7  ;;  %453 = vmatpush3.bf16.msra.mxu1 %v498_v12 }
  0x14   :  { %434 = vmatprep.subr.bf16.mxu0 %v510_v0  ;;  %454 = vmatprep.subr.bf16.mxu1 %v510_v0 }
  0x17   :  { %435 = vmatpush3.bf16.msra.mxu0 %v491_v9  ;;  %455 = vmatpush3.bf16.msra.mxu1 %v499_v14 }
  0x18   :  { %436 = vmatprep.subr.bf16.mxu0 %v510_v0  ;;  %456 = vmatprep.subr.bf16.mxu1 %v510_v0 }
  0x1b   :  { %437 = vmatpush3.bf16.msra.mxu0 %v492_v11  ;;  %457 = vmatpush3.bf16.msra.mxu1 %v500_v16 }
  0x1c   :  { %438 = vmatprep.subr.bf16.mxu0 %v510_v0  ;;  %458 = vmatprep.subr.bf16.mxu1 %v510_v0 }
  0x1f   :  { %439 = vmatpush3.bf16.msra.mxu0 %v493_v13  ;;  %459 = vmatpush3.bf16.msra.mxu1 %v501_v17 }
  0x20   :  { %464 = vmatprep.subr.bf16.mxu0 %v510_v0 }
  0x22   :  { %441 = vmatmul.mubr.bf16.vlgmr.msra.gmra.mxu0 %v27_v15 }
  0x23   :  { %480 = vmatprep.mubr.msk.bf16.mxu0 %vm511_vm0, %v510_v0  ;;  %465 = vmatpush3.bf16.msra.mxu0 %v502_v18 }
  0x24   :  { %466 = vmatprep.subr.bf16.mxu0 %v510_v0 }
  0x27   :  { %467 = vmatpush3.bf16.msra.mxu0 %v503_v19 }
  0x28   :  { %468 = vmatprep.subr.bf16.mxu0 %v510_v0 }
  0x2b   :  { %469 = vmatpush3.bf16.msra.mxu0 %v504_v20 }
  0x2c   :  { %470 = vmatprep.subr.bf16.mxu0 %v510_v0 }
  0x2f   :  { %471 = vmatpush3.bf16.msra.mxu0 %v505_v21 }
  0x30   :  { %472 = vmatprep.subr.bf16.mxu0 %v510_v0 }
  0x33   :  { %473 = vmatpush3.bf16.msra.mxu0 %v506_v22 }
  0x34   :  { %474 = vmatprep.subr.bf16.mxu0 %v510_v0 }
  0x37   :  { %475 = vmatpush3.bf16.msra.mxu0 %v507_v23 }
  0x38   :  { %476 = vmatprep.subr.bf16.mxu0 %v510_v0 }
  0x3b   :  { %477 = vmatpush3.bf16.msra.mxu0 %v508_v32 }
  0x3c   :  { %478 = vmatprep.subr.bf16.mxu0 %v510_v0 }
  0x3f   :  { %479 = vmatpush3.bf16.msra.mxu0 %v509_v33 }
  0xe2   :  { %v133_v25 = vpop.f32.mrf.mxu0 }
  0xe3   :  { %v134_v26 = vadd.f32 %v370_v24, %v133_v25 }
  0xe4   :  { %v442_v27 = vpop.f32.mrf.mxu0 }
  0xe5   :  { %v139_v28 = vmax.f32 %v134_v26, 0.0 }
  0xe6   :  { %v136_v29 = vpop.f32.mrf.mxu0 }
  0xe7   :  { %v140_v30 = vpack.c.bf16 %v139_v28, %v139_v28 }
  0xe8   :  { %v443_v31 = vpop.f32.mrf.mxu0 }
  0xe9   :  { %461 = vmatmul.mubr.bf16.vlgmr.msra.gmra.mxu1 %v140_v30 }
 0x1a9   :  { %v246_v35 = vpop.f32.mrf.mxu1 }
 0x1aa   :  { %v247_v36 = vadd.f32 %v379_v34, %v246_v35 }
 0x1ab   :  { %v462_v37 = vpop.f32.mrf.mxu1 }
 0x1ac   :  { %v252_v38 = vmax.f32 %v247_v36, 0.0 }
 0x1ad   :  { %v249_v39 = vpop.f32.mrf.mxu1 }
 0x1ae   :  { %v253_v40 = vpack.c.bf16 %v252_v38, %v252_v38 }
 0x1af   :  { %v463_v41 = vpop.f32.mrf.mxu1 }
 0x1b0   :  { %481 = vmatmul.mubr.bf16.vlgmr.msra.gmra.mxu0 %v253_v40 }
 0x270   :  { %v359_v43 = vpop.f32.mrf.mxu0 }
 0x271   :  { %v360_v44 = vadd.f32 %v388_v42, %v359_v43 }
 0x272   :  { %v482_v45 = vpop.f32.mrf.mxu0 }
 0x273   :  { %365 = vst [vmem:[%s676_s7] sm:$0xff] %v360_v44 }
 0x274   :  { %v362_v46 = vpop.f32.mrf.mxu0 }
 0x276   :  { %v483_v47 = vpop.f32.mrf.mxu0 }

</bundles_post_ra>
